<compile_context>
chip_gen: v7x
topology: tpu7x:2x2x1
jax: 0.10.0
libtpu: 0.0.40
codegen_flags: <defaults>
</compile_context>

<pallas_src>
import functools

import jax
import jax.numpy as jnp
from jax.experimental import pallas as pl
from jax.experimental.pallas import tpu as pltpu

# TODO(synk): QuantStub/DeQuantStub/FloatFunctional observer (fake-quant) state
# of the QAT module is not modeled; this implements the float forward pass.


def _fused_input_block_kernel(x_ref, wb1_ref, b1_ref, a1_ref,
                              wb2_ref, b2_ref, a2_ref,
                              o_ref, xpad_ref, ypad_ref, *, H, nb):
    """One grid step = `nb` batch images stacked along rows; both layers fused.

    x_ref:    (M, W*Cin)   bf16 lane-folded input slab, M = nb*H
    wb1_ref:  (3, W*Cin, W*Cout)  bf16 block-banded weights, layer 1 (per dh)
    b1_ref:   (1, W*Cout)  f32 bias tiled along W
    a1_ref:   (1, W*Cout)  f32 PReLU slope tiled along W
    wb2_ref:  (3, W*Cout, W*Cout) bf16 block-banded weights, layer 2
    b2_ref, a2_ref: (1, W*Cout) f32
    o_ref:    (M, W*Cout)  f32 lane-dense output slab
    xpad_ref: VMEM (M+2, W*Cin)  f32 H-halo padded input copy
    ypad_ref: VMEM (M+2, W*Cout) f32 H-halo padded layer-1 activation
    """
    M = nb * H

    # Zero the halo rows ONCE: VMEM scratch persists across grid iterations.
    @pl.when(pl.program_id(0) == 0)
    def _():
        xpad_ref[0:1, :] = jnp.zeros((1, xpad_ref.shape[1]), jnp.float32)
        xpad_ref[M + 1:M + 2, :] = jnp.zeros((1, xpad_ref.shape[1]), jnp.float32)
        ypad_ref[0:1, :] = jnp.zeros((1, ypad_ref.shape[1]), jnp.float32)
        ypad_ref[M + 1:M + 2, :] = jnp.zeros((1, ypad_ref.shape[1]), jnp.float32)

    if nb > 1:
        # Image boundaries inside the stacked slab: zero the cross-image taps.
        row = jax.lax.broadcasted_iota(jnp.int32, (M, 1), 0)
        ok_up = (row % H) != 0          # row m-1 belongs to the same image
        ok_dn = (row % H) != (H - 1)    # row m+1 belongs to the same image
    else:
        ok_up = ok_dn = None

    def conv_prelu(center_bf16, pad_ref, wb_ref, b_ref, a_ref):
        # 3x3 conv == 3 banded matmuls (dw taps + W zero-pad baked into wb).
        up = pad_ref[0:M, :]            # input row m-1 (zero outside image)
        dn = pad_ref[2:M + 2, :]        # input row m+1
        if nb > 1:
            up = jnp.where(ok_up, up, 0.0)
            dn = jnp.where(ok_dn, dn, 0.0)
        acc = jnp.dot(up.astype(jnp.bfloat16), wb_ref[0],
                      preferred_element_type=jnp.float32)
        acc = acc + jnp.dot(center_bf16, wb_ref[1],
                            preferred_element_type=jnp.float32)
        acc = acc + jnp.dot(dn.astype(jnp.bfloat16), wb_ref[2],
                            preferred_element_type=jnp.float32)
        acc = acc + b_ref[...]
        # PReLU (what QPReLU computes): max(x, 0) + alpha * min(x, 0), in f32.
        return jnp.maximum(acc, 0.0) + a_ref[...] * jnp.minimum(acc, 0.0)

    # ---- Layer 1: center tap straight from x_ref; halo via padded scratch. ----
    x_bf16 = x_ref[...]                                      # (M, W*Cin) bf16
    xpad_ref[1:M + 1, :] = x_bf16.astype(jnp.float32)
    y1 = conv_prelu(x_bf16, xpad_ref, wb1_ref, b1_ref, a1_ref)   # (M, W*Cout) f32

    # ---- Layer 2: intermediate stays in VMEM (no HBM round trip). ----
    ypad_ref[1:M + 1, :] = y1
    y2 = conv_prelu(y1.astype(jnp.bfloat16), ypad_ref, wb2_ref, b2_ref, a2_ref)

    o_ref[...] = y2.astype(o_ref.dtype)


def _band_weights(w, W):
    """(3, 3, Cin, Cout) conv weights -> (3, W*Cin, W*Cout) block-banded.

    band[dh, wi*Cin + ci, wo*Cout + co] = w[dh, dw, ci, co] where wi = wo+dw-1,
    zero elsewhere (width zero-padding is implicit in the band structure).
    """
    KH, KW, Cin, Cout = w.shape
    wi = jnp.arange(W)[None, :, None]
    wo = jnp.arange(W)[None, None, :]
    dw = jnp.arange(KW)[:, None, None]
    sel = (wi == wo + dw - 1).astype(w.dtype)                 # (KW, W, W)
    band = jnp.einsum("dio,kdce->kicoe", sel, w)              # (KH, W, Cin, W, Cout)
    return band.reshape(KH, W * Cin, W * Cout)


def prepare_input_block_params(params, W):
    """Hoisted (once-per-params) prep: bf16 band weights + tiled f32 bias/alpha."""
    Cout = params["w1"].shape[-1]
    wb1 = _band_weights(params["w1"].astype(jnp.float32), W).astype(jnp.bfloat16)
    wb2 = _band_weights(params["w2"].astype(jnp.float32), W).astype(jnp.bfloat16)
    b1 = jnp.tile(params["b1"].astype(jnp.float32), W).reshape(1, W * Cout)
    a1 = jnp.tile(params["alpha1"].astype(jnp.float32), W).reshape(1, W * Cout)
    b2 = jnp.tile(params["b2"].astype(jnp.float32), W).reshape(1, W * Cout)
    a2 = jnp.tile(params["alpha2"].astype(jnp.float32), W).reshape(1, W * Cout)
    return {"wb1": wb1, "wb2": wb2, "b1": b1, "a1": a1, "b2": b2, "a2": a2}


def _pick_batch_tile(N, H, max_rows=256):
    """Largest divisor nb of N with nb*H <= max_rows rows per matmul, preferring
    to keep >= 2 grid steps so both v7x TensorCores get a 'parallel' step."""
    divs = [d for d in range(1, N + 1) if N % d == 0 and d * H <= max_rows]
    if not divs:
        return 1
    multi = [d for d in divs if N // d >= 2]
    return max(multi) if multi else max(divs)


def input_block_forward(x_nchw, prepped):
    """Reproduces InputBlock.forward. Input/output are NCHW like PyTorch."""
    N, Cin, H, W = x_nchw.shape
    Ko = prepped["b1"].shape[-1]          # W * Cout
    Cout = Ko // W
    Kin = W * Cin

    # Layout plumbing (outside the kernel): lane-dense folded slab, bf16 in HBM.
    x = jnp.transpose(x_nchw, (0, 2, 3, 1)).reshape(N * H, Kin)
    x = x.astype(jnp.bfloat16)

    nb = _pick_batch_tile(N, H)
    M = nb * H
    grid = (N // nb,)

    kernel = functools.partial(_fused_input_block_kernel, H=H, nb=nb)

    # Executed MXU flops (band zeros included) — scheduler hint only.
    flops = 2 * N * H * 3 * (Kin * Ko + Ko * Ko)
    bytes_accessed = (2 * N * H * Kin + 4 * N * H * Ko
                      + 2 * (prepped["wb1"].size + prepped["wb2"].size)
                      + 4 * 4 * Ko)

    # VMEM budget: double-buffered I/O slabs + (conservatively 2x) weights +
    # padded scratch.  Capped at 64 MiB so it stays valid on v7x.
    est = (2 * (M * Kin * 2 + M * Ko * 4)
           + 2 * (prepped["wb1"].size * 2 + prepped["wb2"].size * 2 + 4 * Ko * 4)
           + (M + 2) * Kin * 4 + (M + 2) * Ko * 4)
    vmem_limit = int(min(max(2 * est + (8 << 20), 32 << 20), 64 << 20))

    out = pl.pallas_call(
        kernel,
        out_shape=jax.ShapeDtypeStruct((N * H, Ko), jnp.float32),
        grid=grid,
        in_specs=[
            pl.BlockSpec((M, Kin), lambda n: (n, 0)),
            pl.BlockSpec((3, Kin, Ko), lambda n: (0, 0, 0)),
            pl.BlockSpec((1, Ko), lambda n: (0, 0)),
            pl.BlockSpec((1, Ko), lambda n: (0, 0)),
            pl.BlockSpec((3, Ko, Ko), lambda n: (0, 0, 0)),
            pl.BlockSpec((1, Ko), lambda n: (0, 0)),
            pl.BlockSpec((1, Ko), lambda n: (0, 0)),
        ],
        out_specs=pl.BlockSpec((M, Ko), lambda n: (n, 0)),
        scratch_shapes=[
            pltpu.VMEM((M + 2, Kin), jnp.float32),
            pltpu.VMEM((M + 2, Ko), jnp.float32),
        ],
        compiler_params=pltpu.CompilerParams(
            dimension_semantics=("parallel",),
            vmem_limit_bytes=vmem_limit),
        cost_estimate=pl.CostEstimate(
            flops=flops, transcendentals=0, bytes_accessed=bytes_accessed),
    )(x, prepped["wb1"], prepped["b1"], prepped["a1"],
      prepped["wb2"], prepped["b2"], prepped["a2"])

    out = out.reshape(N, H, W, Cout)
    return jnp.transpose(out, (0, 3, 1, 2))      # NHWC -> NCHW


def init_params(key, in_channels, out_channels):
    k1, k2, k3, k4 = jax.random.split(key, 4)
    fan1 = in_channels * 9
    fan2 = out_channels * 9
    w1 = jax.random.uniform(k1, (3, 3, in_channels, out_channels),
                            minval=-1.0, maxval=1.0) / jnp.sqrt(fan1)
    b1 = jax.random.uniform(k2, (out_channels,),
                            minval=-1.0, maxval=1.0) / jnp.sqrt(fan1)
    w2 = jax.random.uniform(k3, (3, 3, out_channels, out_channels),
                            minval=-1.0, maxval=1.0) / jnp.sqrt(fan2)
    b2 = jax.random.uniform(k4, (out_channels,),
                            minval=-1.0, maxval=1.0) / jnp.sqrt(fan2)
    alpha1 = jnp.full((out_channels,), 0.25, dtype=jnp.float32)  # QPReLU init
    alpha2 = jnp.full((out_channels,), 0.25, dtype=jnp.float32)
    return {"w1": w1.astype(jnp.float32), "b1": b1.astype(jnp.float32),
            "w2": w2.astype(jnp.float32), "b2": b2.astype(jnp.float32),
            "alpha1": alpha1, "alpha2": alpha2}


def _reference_forward(x_nchw, params):
    """Pure-JAX reference (lax.conv, f32) for a sanity check."""
    def conv(x, w, b):
        w_oihw = jnp.transpose(w, (3, 2, 0, 1))
        y = jax.lax.conv_general_dilated(
            x, w_oihw, window_strides=(1, 1), padding=((1, 1), (1, 1)),
            dimension_numbers=("NCHW", "OIHW", "NCHW"))
        return y + b.reshape(1, -1, 1, 1)

    def prelu(x, a):
        a = a.reshape(1, -1, 1, 1)
        return jnp.maximum(x, 0.0) + a * jnp.minimum(x, 0.0)

    x = prelu(conv(x_nchw, params["w1"], params["b1"]), params["alpha1"])
    x = prelu(conv(x, params["w2"], params["b2"]), params["alpha2"])
    return x


if __name__ == "__main__":
    key = jax.random.PRNGKey(0)
    k_x, k_p = jax.random.split(key)

    N, Cin, Cout, H, W = 2, 4, 8, 16, 16
    x = jax.random.normal(k_x, (N, Cin, H, W), dtype=jnp.float32)
    params = init_params(k_p, Cin, Cout)

    # Hoisted parameter prep: done once per parameter set, NOT per forward.
    prepped = prepare_input_block_params(params, W)

    fwd = jax.jit(input_block_forward)
    out = jax.block_until_ready(fwd(x, prepped))
    ref = jax.block_until_ready(_reference_forward(x, params))

    assert out.shape == (N, Cout, H, W)
    # bf16 MXU operands with f32 accumulation -> looser tolerance than pure f32.
    err = float(jnp.max(jnp.abs(out - ref)))
    assert jnp.allclose(out, ref, atol=3e-2, rtol=3e-2), (
        f"mismatch vs reference: max abs err {err}")

    print("KERNEL_OK")
</pallas_src>

<mosaic_0001>
module attributes {stable_mosaic.version = 11 : i64} {
  func.func @_fused_input_block_kernel(%arg0: i32, %arg1: memref<16x64xbf16, #tpu.memory_space<vmem>>, %arg2: memref<3x64x128xbf16, #tpu.memory_space<vmem>>, %arg3: memref<1x128xf32, #tpu.memory_space<vmem>>, %arg4: memref<1x128xf32, #tpu.memory_space<vmem>>, %arg5: memref<3x128x128xbf16, #tpu.memory_space<vmem>>, %arg6: memref<1x128xf32, #tpu.memory_space<vmem>>, %arg7: memref<1x128xf32, #tpu.memory_space<vmem>>, %arg8: memref<16x128xf32, #tpu.memory_space<vmem>>, %arg9: memref<18x64xf32, #tpu.memory_space<vmem>>, %arg10: memref<18x128xf32, #tpu.memory_space<vmem>>) attributes {dimension_semantics = [#tpu.dimension_semantics<parallel>], iteration_bounds = array<i64: 2>, scalar_prefetch = 0 : i64, scratch_operands = 2 : i64, tpu.core_type = #tpu.core_type<tc>, window_params = [{transform_indices = @transform_0, window_bounds = array<i64: 16, 64>}, {pipeline_mode = #tpu.pipeline_mode<synchronous>, transform_indices = @transform_1, window_bounds = array<i64: 3, 64, 128>}, {pipeline_mode = #tpu.pipeline_mode<synchronous>, transform_indices = @transform_2, window_bounds = array<i64: 1, 128>}, {pipeline_mode = #tpu.pipeline_mode<synchronous>, transform_indices = @transform_3, window_bounds = array<i64: 1, 128>}, {pipeline_mode = #tpu.pipeline_mode<synchronous>, transform_indices = @transform_4, window_bounds = array<i64: 3, 128, 128>}, {pipeline_mode = #tpu.pipeline_mode<synchronous>, transform_indices = @transform_5, window_bounds = array<i64: 1, 128>}, {pipeline_mode = #tpu.pipeline_mode<synchronous>, transform_indices = @transform_6, window_bounds = array<i64: 1, 128>}, {transform_indices = @transform_7, window_bounds = array<i64: 16, 128>}]} {
    %c0_i32 = arith.constant 0 : i32
    %0 = arith.cmpi eq, %arg0, %c0_i32 : i32
    %1 = arith.extui %0 : i1 to i32
    %c0_i32_0 = arith.constant 0 : i32
    %2 = arith.cmpi ne, %1, %c0_i32_0 : i32
    scf.if %2 {
      %cst_49 = arith.constant 0.000000e+00 : f32
      %61 = vector.broadcast %cst_49 : f32 to vector<1x64xf32>
      %c0_50 = arith.constant 0 : index
      %c0_51 = arith.constant 0 : index
      %62 = vector.load %arg9[%c0_50, %c0_51] : memref<18x64xf32, #tpu.memory_space<vmem>>, vector<1x64xf32>
      tpu.vector_store %arg9[%c0_50, %c0_51], %61 {strides = array<i32>} : memref<18x64xf32, #tpu.memory_space<vmem>>, vector<1x64xf32>,
      %cst_52 = arith.constant 0.000000e+00 : f32
      %63 = vector.broadcast %cst_52 : f32 to vector<1x64xf32>
      %c17 = arith.constant 17 : index
      %c0_53 = arith.constant 0 : index
      %64 = vector.load %arg9[%c17, %c0_53] : memref<18x64xf32, #tpu.memory_space<vmem>>, vector<1x64xf32>
      tpu.vector_store %arg9[%c17, %c0_53], %63 {strides = array<i32>} : memref<18x64xf32, #tpu.memory_space<vmem>>, vector<1x64xf32>,
      %cst_54 = arith.constant 0.000000e+00 : f32
      %65 = vector.broadcast %cst_54 : f32 to vector<1x128xf32>
      %c0_55 = arith.constant 0 : index
      %c0_56 = arith.constant 0 : index
      %66 = vector.load %arg10[%c0_55, %c0_56] : memref<18x128xf32, #tpu.memory_space<vmem>>, vector<1x128xf32>
      tpu.vector_store %arg10[%c0_55, %c0_56], %65 {strides = array<i32>} : memref<18x128xf32, #tpu.memory_space<vmem>>, vector<1x128xf32>,
      %cst_57 = arith.constant 0.000000e+00 : f32
      %67 = vector.broadcast %cst_57 : f32 to vector<1x128xf32>
      %c17_58 = arith.constant 17 : index
      %c0_59 = arith.constant 0 : index
      %68 = vector.load %arg10[%c17_58, %c0_59] : memref<18x128xf32, #tpu.memory_space<vmem>>, vector<1x128xf32>
      tpu.vector_store %arg10[%c17_58, %c0_59], %67 {strides = array<i32>} : memref<18x128xf32, #tpu.memory_space<vmem>>, vector<1x128xf32>,
    } else {
    }
    %c0 = arith.constant 0 : index
    %c0_1 = arith.constant 0 : index
    %3 = vector.load %arg1[%c0, %c0_1] : memref<16x64xbf16, #tpu.memory_space<vmem>>, vector<16x64xbf16>
    %4 = arith.extf %3 : vector<16x64xbf16> to vector<16x64xf32>
    %c1 = arith.constant 1 : index
    %c0_2 = arith.constant 0 : index
    %5 = vector.load %arg9[%c1, %c0_2] : memref<18x64xf32, #tpu.memory_space<vmem>>, vector<16x64xf32>
    tpu.vector_store %arg9[%c1, %c0_2], %4 {strides = array<i32>} : memref<18x64xf32, #tpu.memory_space<vmem>>, vector<16x64xf32>,
    %c0_3 = arith.constant 0 : index
    %c0_4 = arith.constant 0 : index
    %6 = vector.load %arg9[%c0_3, %c0_4] : memref<18x64xf32, #tpu.memory_space<vmem>>, vector<16x64xf32>
    %c2 = arith.constant 2 : index
    %c0_5 = arith.constant 0 : index
    %7 = vector.load %arg9[%c2, %c0_5] : memref<18x64xf32, #tpu.memory_space<vmem>>, vector<16x64xf32>
    %8 = arith.truncf %6 : vector<16x64xf32> to vector<16x64xbf16>
    %c0_6 = arith.constant 0 : index
    %c0_7 = arith.constant 0 : index
    %c0_8 = arith.constant 0 : index
    %9 = vector.load %arg2[%c0_6, %c0_7, %c0_8] : memref<3x64x128xbf16, #tpu.memory_space<vmem>>, vector<1x64x128xbf16>
    %10 = vector.shape_cast %9 : vector<1x64x128xbf16> to vector<64x128xbf16>
    %cst = arith.constant dense<0.000000e+00> : vector<16x128xf32>
    %11 = tpu.matmul %8, %10, %cst {dimension_numbers = #tpu.dot_dimension_numbers<[1], [0], [0], [1], [0, 0, 1, 1], [], []>} : vector<16x64xbf16>, vector<64x128xbf16>, vector<16x128xf32> -> vector<16x128xf32>
    %c1_9 = arith.constant 1 : index
    %c0_10 = arith.constant 0 : index
    %c0_11 = arith.constant 0 : index
    %12 = vector.load %arg2[%c1_9, %c0_10, %c0_11] : memref<3x64x128xbf16, #tpu.memory_space<vmem>>, vector<1x64x128xbf16>
    %13 = vector.shape_cast %12 : vector<1x64x128xbf16> to vector<64x128xbf16>
    %cst_12 = arith.constant dense<0.000000e+00> : vector<16x128xf32>
    %14 = tpu.matmul %3, %13, %cst_12 {dimension_numbers = #tpu.dot_dimension_numbers<[1], [0], [0], [1], [0, 0, 1, 1], [], []>} : vector<16x64xbf16>, vector<64x128xbf16>, vector<16x128xf32> -> vector<16x128xf32>
    %15 = arith.addf %11, %14 : vector<16x128xf32>
    %16 = arith.truncf %7 : vector<16x64xf32> to vector<16x64xbf16>
    %c2_13 = arith.constant 2 : index
    %c0_14 = arith.constant 0 : index
    %c0_15 = arith.constant 0 : index
    %17 = vector.load %arg2[%c2_13, %c0_14, %c0_15] : memref<3x64x128xbf16, #tpu.memory_space<vmem>>, vector<1x64x128xbf16>
    %18 = vector.shape_cast %17 : vector<1x64x128xbf16> to vector<64x128xbf16>
    %cst_16 = arith.constant dense<0.000000e+00> : vector<16x128xf32>
    %19 = tpu.matmul %16, %18, %cst_16 {dimension_numbers = #tpu.dot_dimension_numbers<[1], [0], [0], [1], [0, 0, 1, 1], [], []>} : vector<16x64xbf16>, vector<64x128xbf16>, vector<16x128xf32> -> vector<16x128xf32>
    %20 = arith.addf %15, %19 : vector<16x128xf32>
    %c0_17 = arith.constant 0 : index
    %c0_18 = arith.constant 0 : index
    %21 = vector.load %arg3[%c0_17, %c0_18] : memref<1x128xf32, #tpu.memory_space<vmem>>, vector<1x128xf32>
    %22 = vector.broadcast %21 : vector<1x128xf32> to vector<16x128xf32>
    %23 = arith.addf %20, %22 : vector<16x128xf32>
    %cst_19 = arith.constant 0.000000e+00 : f32
    %24 = vector.broadcast %cst_19 : f32 to vector<16x128xf32>
    %25 = arith.maximumf %23, %24 : vector<16x128xf32>
    %c0_20 = arith.constant 0 : index
    %c0_21 = arith.constant 0 : index
    %26 = vector.load %arg4[%c0_20, %c0_21] : memref<1x128xf32, #tpu.memory_space<vmem>>, vector<1x128xf32>
    %cst_22 = arith.constant 0.000000e+00 : f32
    %27 = vector.broadcast %cst_22 : f32 to vector<16x128xf32>
    %28 = arith.minimumf %23, %27 : vector<16x128xf32>
    %29 = vector.broadcast %26 : vector<1x128xf32> to vector<16x128xf32>
    %30 = arith.mulf %29, %28 : vector<16x128xf32>
    %31 = arith.addf %25, %30 : vector<16x128xf32>
    %c1_23 = arith.constant 1 : index
    %c0_24 = arith.constant 0 : index
    %32 = vector.load %arg10[%c1_23, %c0_24] : memref<18x128xf32, #tpu.memory_space<vmem>>, vector<16x128xf32>
    tpu.vector_store %arg10[%c1_23, %c0_24], %31 {strides = array<i32>} : memref<18x128xf32, #tpu.memory_space<vmem>>, vector<16x128xf32>,
    %33 = arith.truncf %31 : vector<16x128xf32> to vector<16x128xbf16>
    %c0_25 = arith.constant 0 : index
    %c0_26 = arith.constant 0 : index
    %34 = vector.load %arg10[%c0_25, %c0_26] : memref<18x128xf32, #tpu.memory_space<vmem>>, vector<16x128xf32>
    %c2_27 = arith.constant 2 : index
    %c0_28 = arith.constant 0 : index
    %35 = vector.load %arg10[%c2_27, %c0_28] : memref<18x128xf32, #tpu.memory_space<vmem>>, vector<16x128xf32>
    %36 = arith.truncf %34 : vector<16x128xf32> to vector<16x128xbf16>
    %c0_29 = arith.constant 0 : index
    %c0_30 = arith.constant 0 : index
    %c0_31 = arith.constant 0 : index
    %37 = vector.load %arg5[%c0_29, %c0_30, %c0_31] : memref<3x128x128xbf16, #tpu.memory_space<vmem>>, vector<1x128x128xbf16>
    %38 = vector.shape_cast %37 : vector<1x128x128xbf16> to vector<128x128xbf16>
    %cst_32 = arith.constant dense<0.000000e+00> : vector<16x128xf32>
    %39 = tpu.matmul %36, %38, %cst_32 {dimension_numbers = #tpu.dot_dimension_numbers<[1], [0], [0], [1], [0, 0, 1, 1], [], []>} : vector<16x128xbf16>, vector<128x128xbf16>, vector<16x128xf32> -> vector<16x128xf32>
    %c1_33 = arith.constant 1 : index
    %c0_34 = arith.constant 0 : index
    %c0_35 = arith.constant 0 : index
    %40 = vector.load %arg5[%c1_33, %c0_34, %c0_35] : memref<3x128x128xbf16, #tpu.memory_space<vmem>>, vector<1x128x128xbf16>
    %41 = vector.shape_cast %40 : vector<1x128x128xbf16> to vector<128x128xbf16>
    %cst_36 = arith.constant dense<0.000000e+00> : vector<16x128xf32>
    %42 = tpu.matmul %33, %41, %cst_36 {dimension_numbers = #tpu.dot_dimension_numbers<[1], [0], [0], [1], [0, 0, 1, 1], [], []>} : vector<16x128xbf16>, vector<128x128xbf16>, vector<16x128xf32> -> vector<16x128xf32>
    %43 = arith.addf %39, %42 : vector<16x128xf32>
    %44 = arith.truncf %35 : vector<16x128xf32> to vector<16x128xbf16>
    %c2_37 = arith.constant 2 : index
    %c0_38 = arith.constant 0 : index
    %c0_39 = arith.constant 0 : index
    %45 = vector.load %arg5[%c2_37, %c0_38, %c0_39] : memref<3x128x128xbf16, #tpu.memory_space<vmem>>, vector<1x128x128xbf16>
    %46 = vector.shape_cast %45 : vector<1x128x128xbf16> to vector<128x128xbf16>
    %cst_40 = arith.constant dense<0.000000e+00> : vector<16x128xf32>
    %47 = tpu.matmul %44, %46, %cst_40 {dimension_numbers = #tpu.dot_dimension_numbers<[1], [0], [0], [1], [0, 0, 1, 1], [], []>} : vector<16x128xbf16>, vector<128x128xbf16>, vector<16x128xf32> -> vector<16x128xf32>
    %48 = arith.addf %43, %47 : vector<16x128xf32>
    %c0_41 = arith.constant 0 : index
    %c0_42 = arith.constant 0 : index
    %49 = vector.load %arg6[%c0_41, %c0_42] : memref<1x128xf32, #tpu.memory_space<vmem>>, vector<1x128xf32>
    %50 = vector.broadcast %49 : vector<1x128xf32> to vector<16x128xf32>
    %51 = arith.addf %48, %50 : vector<16x128xf32>
    %cst_43 = arith.constant 0.000000e+00 : f32
    %52 = vector.broadcast %cst_43 : f32 to vector<16x128xf32>
    %53 = arith.maximumf %51, %52 : vector<16x128xf32>
    %c0_44 = arith.constant 0 : index
    %c0_45 = arith.constant 0 : index
    %54 = vector.load %arg7[%c0_44, %c0_45] : memref<1x128xf32, #tpu.memory_space<vmem>>, vector<1x128xf32>
    %cst_46 = arith.constant 0.000000e+00 : f32
    %55 = vector.broadcast %cst_46 : f32 to vector<16x128xf32>
    %56 = arith.minimumf %51, %55 : vector<16x128xf32>
    %57 = vector.broadcast %54 : vector<1x128xf32> to vector<16x128xf32>
    %58 = arith.mulf %57, %56 : vector<16x128xf32>
    %59 = arith.addf %53, %58 : vector<16x128xf32>
    %c0_47 = arith.constant 0 : index
    %c0_48 = arith.constant 0 : index
    %60 = vector.load %arg8[%c0_47, %c0_48] : memref<16x128xf32, #tpu.memory_space<vmem>>, vector<16x128xf32>
    tpu.vector_store %arg8[%c0_47, %c0_48], %59 {strides = array<i32>} : memref<16x128xf32, #tpu.memory_space<vmem>>, vector<16x128xf32>,
    return
  }
  func.func @transform_0(%arg0: i32) -> (i32, i32) {
    %c0_i32 = arith.constant 0 : i32
    %c0_i32_0 = arith.constant 0 : i32
    return %arg0, %c0_i32 : i32, i32
  }
  func.func @transform_1(%arg0: i32) -> (i32, i32, i32) {
    %c0_i32 = arith.constant 0 : i32
    %c0_i32_0 = arith.constant 0 : i32
    %c0_i32_1 = arith.constant 0 : i32
    %c0_i32_2 = arith.constant 0 : i32
    return %c0_i32, %c0_i32_0, %c0_i32_1 : i32, i32, i32
  }
  func.func @transform_2(%arg0: i32) -> (i32, i32) {
    %c0_i32 = arith.constant 0 : i32
    %c0_i32_0 = arith.constant 0 : i32
    %c0_i32_1 = arith.constant 0 : i32
    return %c0_i32, %c0_i32_0 : i32, i32
  }
  func.func @transform_3(%arg0: i32) -> (i32, i32) {
    %c0_i32 = arith.constant 0 : i32
    %c0_i32_0 = arith.constant 0 : i32
    %c0_i32_1 = arith.constant 0 : i32
    return %c0_i32, %c0_i32_0 : i32, i32
  }
  func.func @transform_4(%arg0: i32) -> (i32, i32, i32) {
    %c0_i32 = arith.constant 0 : i32
    %c0_i32_0 = arith.constant 0 : i32
    %c0_i32_1 = arith.constant 0 : i32
    %c0_i32_2 = arith.constant 0 : i32
    return %c0_i32, %c0_i32_0, %c0_i32_1 : i32, i32, i32
  }
  func.func @transform_5(%arg0: i32) -> (i32, i32) {
    %c0_i32 = arith.constant 0 : i32
    %c0_i32_0 = arith.constant 0 : i32
    %c0_i32_1 = arith.constant 0 : i32
    return %c0_i32, %c0_i32_0 : i32, i32
  }
  func.func @transform_6(%arg0: i32) -> (i32, i32) {
    %c0_i32 = arith.constant 0 : i32
    %c0_i32_0 = arith.constant 0 : i32
    %c0_i32_1 = arith.constant 0 : i32
    return %c0_i32, %c0_i32_0 : i32, i32
  }
  func.func @transform_7(%arg0: i32) -> (i32, i32) {
    %c0_i32 = arith.constant 0 : i32
    %c0_i32_0 = arith.constant 0 : i32
    return %arg0, %c0_i32 : i32, i32
  }
}

</mosaic_0001>

<bundles_post_ra>
// kernel: input_block_forward.1
= control target key start
LH: loop header
LB: loop body
LE: loop exit
PB: predicated region body
PF: predicated region fallthrough
CT: control target
= control target key end

     0   :  { %s1317_s24 = smov 0   ;;  %s1514_s0 = inlined_call_operand.vmem [shape: bf16[32,64], index: 0, kind: input, shape index: {}]   ;;  %s1515_s1 = inlined_call_operand.vmem [shape: bf16[3,64,128], index: 1, kind: input, shape index: {}]   ;;  %s1516_s2 = inlined_call_operand.vmem [shape: f32[1,128], index: 2, kind: input, shape index: {}]   ;;  %s1517_s3 = inlined_call_operand.vmem [shape: f32[1,128], index: 3, kind: input, shape index: {}]   ;;  %s1518_s4 = inlined_call_operand.vmem [shape: bf16[3,128,128], index: 4, kind: input, shape index: {}]   ;;  %s1519_s5 = inlined_call_operand.vmem [shape: f32[1,128], index: 5, kind: input, shape index: {}]   ;;  %s1520_s6 = inlined_call_operand.vmem [shape: f32[1,128], index: 6, kind: input, shape index: {}]   ;;  %s1521_s7 = inlined_call_operand.vmem [shape: f32[32,128], index: 7, kind: output, shape index: {}]  }
   0x1 LB: > { %s976_s25 = sadd.s32 4294967295, %s1272_s24   ;;  %p980_p0 = scmp.ge.s32.totalorder %s1272_s24, 1  ;;  %s1272_s24 = sphi %s1317_s24, %s17_s24  }
   0x2   : > { %p238_p1 = scmp.lt.s32.totalorder %s1272_s24, 3 }
   0x4   : > { %p239_p2 = pnand %p980_p0, %p238_p1 }
   0x5   : > { %s981_s26 = sshll.u32 (!%p239_p2), %s976_s25, 1  ;;  %p985_p4 = scmp.ne.s32.totalorder (!%p239_p2), %s976_s25, 0 }
   0x6   : > { %242 = sbr.rel (%p239_p2) target bundleno = 536 (0x218), region = 48  ;;  %p271_p3 = scmp.lt.s32.totalorder (!%p239_p2), %s981_s26, 3 }
   0xd   : > { %s1523_s26 = smov (!%p271_p3, %s981_s26), 3  ;;  %286 = sbr.rel (%p985_p4) target bundleno = 20 (0x14), region = 52 }
   0xe   : > { %s982_s27 = sshll.u32 %s1523_s26, 2  ;;  %s984_s28 = sshll.u32 %s1523_s26, 3  ;;  %vm287_vm0 = vcmask (!%p985_p4), 516096   ;;  %v1274_v0 = vmov (!%p985_p4), 0.0  }
   0xf   : > { %s1328_s8 = scalar_lea.vmem %s1514_s0, %s982_s27  ;;  %s1333_s11 = scalar_lea.vmem %s1521_s7, %s984_s28  ;;  %288 = vst.msk [vmem:[#allocation2] sm:$0x1] (!%p985_p4), %vm287_vm0, %v1274_v0  ;;  %289 = vst.msk [vmem:[#allocation2 + $0x11] sm:$0x1] (!%p985_p4), %vm287_vm0, %v1274_v0 }
  0x10   : > { %290 = vst [vmem:[#allocation3] sm:$0x1] (!%p985_p4), %v1274_v0  ;;  %291 = vst [vmem:[#allocation3 + $0x11] sm:$0x1] (!%p985_p4), %v1274_v0 }
  0x14 PF: > { %v1229_v1 = vld [vmem:[%s1515_s1 + $0x20] sm:$0xff]   ;;  %v1275_v2 = vmov 0.0   ;;  %v1231_v4 = vld [vmem:[%s1515_s1 + $0x28] sm:$0xff]   ;;  %vm1276_vm1 = vmmov 0   ;;  %v1233_v6 = vld [vmem:[%s1515_s1 + $0x30] sm:$0xff]   ;;  %vm296_vm2 = vcmask 523264  }
  0x15   : > { %1122 = vmatprep.subr.bf16.mxu0 %v1275_v2  ;;  %1134 = vmatprep.subr.bf16.mxu1 %v1275_v2  ;;  %v1230_v3 = vld [vmem:[%s1515_s1] sm:$0xff]   ;;  %v1232_v5 = vld [vmem:[%s1515_s1 + $0x8] sm:$0xff]   ;;  %v1234_v7 = vld [vmem:[%s1515_s1 + $0x10] sm:$0xff]  }
  0x16   : > { %1123 = vmatpush3.bf16.msra.mxu0 %v1229_v1  ;;  %1130 = vmatprep.mubr.msk.bf16.mxu0 %vm1276_vm1, %v1275_v2  ;;  %v292_v8 = vld [vmem:[%s1328_s8] sm:$0xff]   ;;  %v1235_v11 = vld [vmem:[%s1515_s1 + $0x38] sm:$0xff]   ;;  %v1238_v14 = vld [vmem:[%s1515_s1 + $0x48] sm:$0xff]  }
  0x17   : > { %1135 = vmatpush3.bf16.msra.mxu1 %v1230_v3  ;;  %1124 = vmatprep.subr.bf16.mxu0 %v1275_v2  ;;  %v294_v9 = vunpack.c.l.bf16 %v292_v8  ;;  %v295_v10 = vunpack.c.h.bf16 %v292_v8  ;;  %v1236_v12 = vld [vmem:[%s1515_s1 + $0x18] sm:$0xff]   ;;  %v1237_v13 = vld [vmem:[%s1515_s1 + $0x40] sm:$0xff]   ;;  %v1239_v19 = vld [vmem:[%s1515_s1 + $0x50] sm:$0xff]  }
  0x18   : > { %1136 = vmatprep.subr.bf16.mxu1 %v1275_v2  ;;  %1142 = vmatprep.mubr.msk.bf16.mxu1 %vm1276_vm1, %v1275_v2  ;;  %v1241_v17 = vld [vmem:[%s1518_s4 + $0x40] sm:$0xff]   ;;  %v1240_v20 = vld [vmem:[%s1515_s1 + $0x58] sm:$0xff]   ;;  %v1242_v24 = vld [vmem:[%s1518_s4 + $0x48] sm:$0xff]  }
  0x19   : > { %297 = vst.msk [vmem:[#allocation2 + $0x1] sm:$0xff] %vm296_vm2, %v294_v9  ;;  %298 = vst.msk [vmem:[#allocation2 + $0x9] sm:$0xff] %vm296_vm2, %v295_v10  ;;  %v1243_v25 = vld [vmem:[%s1518_s4 + $0x50] sm:$0xff]   ;;  %v1244_v26 = vld [vmem:[%s1518_s4] sm:$0xff]  }
  0x1a   : > { %1125 = vmatpush3.bf16.msra.mxu0 %v1231_v4  ;;  %v1246_v27 = vld [vmem:[%s1518_s4 + $0x8] sm:$0xff]   ;;  %v1245_v28 = vld [vmem:[%s1518_s4 + $0x58] sm:$0xff]   ;;  %v1247_v29 = vld [vmem:[%s1518_s4 + $0x60] sm:$0xff]  }
  0x1b   : > { %1137 = vmatpush3.bf16.msra.mxu1 %v1232_v5  ;;  %1126 = vmatprep.subr.bf16.mxu0 %v1275_v2  ;;  %v1248_v30 = vld [vmem:[%s1518_s4 + $0x10] sm:$0xff]   ;;  %v1249_v31 = vld [vmem:[%s1518_s4 + $0x68] sm:$0xff]   ;;  %v1250_v32 = vld [vmem:[%s1518_s4 + $0x18] sm:$0xff]  }
  0x1c   : > { %1138 = vmatprep.subr.bf16.mxu1 %v1275_v2  ;;  %v1251_v33 = vld [vmem:[%s1518_s4 + $0x70] sm:$0xff]   ;;  %v1252_v34 = vld [vmem:[%s1518_s4 + $0x20] sm:$0xff]   ;;  %v1253_v35 = vld [vmem:[%s1518_s4 + $0x78] sm:$0xff]  }
  0x1d   : > { %v1254_v36 = vld [vmem:[%s1518_s4 + $0x28] sm:$0xff]   ;;  %v1256_v37 = vld [vmem:[%s1518_s4 + $0x30] sm:$0xff]   ;;  %v1258_v38 = vld [vmem:[%s1518_s4 + $0x38] sm:$0xff]  }
  0x1e   : > { %1127 = vmatpush3.bf16.msra.mxu0 %v1233_v6  ;;  %v1018_v50 = vld [vmem:[%s1516_s2] ss:$0 sm:$0xff]  ;;  %v1257_v6 = vld [vmem:[%s1518_s4 + $0x88] sm:$0xff]   ;;  %v1259_v9 = vld [vmem:[%s1518_s4 + $0x90] sm:$0xff]  }
  0x1f   : > { %1139 = vmatpush3.bf16.msra.mxu1 %v1234_v7  ;;  %1128 = vmatprep.subr.bf16.mxu0 %v1275_v2  ;;  %v1019_v57 = vld [vmem:[%s1517_s3] ss:$0 sm:$0xff] }
  0x20   : > { %1140 = vmatprep.subr.bf16.mxu1 %v1275_v2  ;;  %v299_v15 = vld [vmem:[#allocation2] sm:$0xff]  ;;  %v300_v16 = vld [vmem:[#allocation2 + $0x8] sm:$0xff] }
  0x21   : > { %v303_v18 = vpack.c.bf16 %v300_v16, %v299_v15  ;;  %v301_v21 = vld [vmem:[#allocation2 + $0x2] sm:$0xff]  ;;  %v302_v22 = vld [vmem:[#allocation2 + $0xa] sm:$0xff]  ;;  %v1264_v15 = vld [vmem:[%s1518_s4 + $0xb8] sm:$0xff]  }
  0x22   : > { %1129 = vmatpush3.bf16.msra.mxu0 %v1235_v11  ;;  %v462_v23 = vpack.c.bf16 %v302_v22, %v301_v21  ;;  %v1255_v4 = vld [vmem:[%s1518_s4 + $0x80] sm:$0xff]   ;;  %v1260_v11 = vld [vmem:[%s1518_s4 + $0x98] sm:$0xff]  }
  0x23   : > { %1141 = vmatpush3.bf16.msra.mxu1 %v1236_v12  ;;  %1146 = vmatprep.subr.bf16.mxu0 %v1275_v2  ;;  %v1261_v12 = vld [vmem:[%s1518_s4 + $0xa0] sm:$0xff]  }
  0x24   : > { %1158 = vmatprep.subr.bf16.mxu1 %v1275_v2 }
  0x25   : > { %1131 = vmatmul.mubr.msk.bf16.vlgmr.msra.gmra.mrb[0].mxu0 %vm296_vm2, %v292_v8 }
  0x26   : > { %1147 = vmatpush3.bf16.msra.mxu0 %v1237_v13  ;;  %1154 = vmatprep.mubr.msk.bf16.mxu0 %vm1276_vm1, %v1275_v2  ;;  %v1262_v13 = vld [vmem:[%s1518_s4 + $0xa8] sm:$0xff]  }
  0x27   : > { %1148 = vmatprep.subr.bf16.mxu0 %v1275_v2  ;;  %1143 = vmatmul.mubr.msk.bf16.vlgmr.msra.gmra.mrb[0].mxu1 %vm296_vm2, %v303_v18 }
  0x28   : > { %1159 = vmatpush3.bf16.msra.mxu1 %v1241_v17  ;;  %1174 = vmatprep.mubr.msk.bf16.mxu1 %vm1276_vm1, %v1275_v2 }
  0x29   : > { %1160 = vmatprep.subr.bf16.mxu1 %v1275_v2 }
  0x2a   : > { %1149 = vmatpush3.bf16.msra.mxu0 %v1238_v14  ;;  %v1263_v14 = vld [vmem:[%s1518_s4 + $0xb0] sm:$0xff]  }
  0x2b   : > { %1150 = vmatprep.subr.bf16.mxu0 %v1275_v2 }
  0x2c   : > { %1161 = vmatpush3.bf16.msra.mxu1 %v1242_v24 }
  0x2d   : > { %1162 = vmatprep.subr.bf16.mxu1 %v1275_v2 }
  0x2e   : > { %1151 = vmatpush3.bf16.msra.mxu0 %v1239_v19 }
  0x2f   : > { %1152 = vmatprep.subr.bf16.mxu0 %v1275_v2 }
  0x30   : > { %1163 = vmatpush3.bf16.msra.mxu1 %v1243_v25 }
  0x31   : > { %1164 = vmatprep.subr.bf16.mxu1 %v1275_v2 }
  0x32   : > { %1153 = vmatpush3.bf16.msra.mxu0 %v1240_v20 }
  0x33   : > { %1178 = vmatprep.subr.bf16.mxu0 %v1275_v2 }
  0x34   : > { %1165 = vmatpush3.bf16.msra.mxu1 %v1245_v28 }
  0x35   : > { %1155 = vmatmul.mubr.msk.bf16.vlgmr.msra.gmra.mrb[4].mxu0 %vm296_vm2, %v462_v23  ;;  %1166 = vmatprep.subr.bf16.mxu1 %v1275_v2 }
  0x36   : > { %1194 = vmatprep.mubr.msk.bf16.mxu0 %vm1276_vm1, %v1275_v2  ;;  %1179 = vmatpush3.bf16.msra.mxu0 %v1244_v26 }
  0x37   : > { %1180 = vmatprep.subr.bf16.mxu0 %v1275_v2 }
  0x38   : > { %1167 = vmatpush3.bf16.msra.mxu1 %v1247_v29 }
  0x39   : > { %1168 = vmatprep.subr.bf16.mxu1 %v1275_v2 }
  0x3a   : > { %1181 = vmatpush3.bf16.msra.mxu0 %v1246_v27 }
  0x3b   : > { %1182 = vmatprep.subr.bf16.mxu0 %v1275_v2 }
  0x3c   : > { %1169 = vmatpush3.bf16.msra.mxu1 %v1249_v31 }
  0x3d   : > { %1170 = vmatprep.subr.bf16.mxu1 %v1275_v2 }
  0x3e   : > { %1183 = vmatpush3.bf16.msra.mxu0 %v1248_v30 }
  0x3f   : > { %1184 = vmatprep.subr.bf16.mxu0 %v1275_v2 }
  0x40   : > { %1171 = vmatpush3.bf16.msra.mxu1 %v1251_v33 }
  0x41   : > { %1172 = vmatprep.subr.bf16.mxu1 %v1275_v2 }
  0x42   : > { %1185 = vmatpush3.bf16.msra.mxu0 %v1250_v32 }
  0x43   : > { %1186 = vmatprep.subr.bf16.mxu0 %v1275_v2 }
  0x44   : > { %1173 = vmatpush3.bf16.msra.mxu1 %v1253_v35 }
  0x45   : > { %1198 = vmatprep.subr.bf16.mxu1 %v1275_v2 }
  0x46   : > { %1187 = vmatpush3.bf16.msra.mxu0 %v1252_v34 }
  0x47   : > { %1188 = vmatprep.subr.bf16.mxu0 %v1275_v2 }
  0x4a   : > { %1189 = vmatpush3.bf16.msra.mxu0 %v1254_v36  ;;  %v1077_v36 = vld [vmem:[%s1520_s6] ss:$0 sm:$0xff] }
  0x4b   : > { %1190 = vmatprep.subr.bf16.mxu0 %v1275_v2 }
  0x4e   : > { %1191 = vmatpush3.bf16.msra.mxu0 %v1256_v37 }
  0x4f   : > { %1192 = vmatprep.subr.bf16.mxu0 %v1275_v2 }
  0x52   : > { %1193 = vmatpush3.bf16.msra.mxu0 %v1258_v38 }
  0xf8   : > { %v387_v39 = vpop.f32.mrb[0].mxu0 }
  0xf9   : > { %v1132_v40 = vpop.f32.mrb[1].mxu0 }
  0xfa   : > { %v390_v41 = vpop.f32.mrb[2].mxu0  ;;  %v455_v43 = vpop.f32.mrb[0].mxu1 }
  0xfb   : > { %v1133_v42 = vpop.f32.mrb[3].mxu0  ;;  %v456_v44 = vadd.f32 %v455_v43, %v387_v39  ;;  %v1144_v45 = vpop.f32.mrb[1].mxu1 }
  0xfc   : > { %v458_v46 = vpop.f32.mrb[2].mxu1 }
  0xfd   : > { %v459_v47 = vadd.f32 %v458_v46, %v390_v41  ;;  %v1145_v48 = vpop.f32.mrb[3].mxu1 }
 0x108   : > { %v533_v49 = vpop.f32.mrb[4].mxu0 }
 0x109   : > { %v540_v51 = vadd.f32 %v533_v49, %v456_v44  ;;  %v1156_v52 = vpop.f32.mrb[5].mxu0 }
 0x10a   : > { %v536_v53 = vpop.f32.mrb[6].mxu0 }
 0x10b   : > { %v549_v54 = vadd.f32 %v1018_v50, %v540_v51  ;;  %v541_v55 = vadd.f32 %v536_v53, %v459_v47  ;;  %v1157_v56 = vpop.f32.mrb[7].mxu0 }
 0x10d   : > { %v554_v58 = vmin.f32 %v549_v54, 0.0  ;;  %v550_v59 = vadd.f32 %v1018_v50, %v541_v55  ;;  %v551_v60 = vmax.f32 %v549_v54, 0.0 }
 0x10f   : > { %v562_v61 = vmul.f32 %v1019_v57, %v554_v58  ;;  %v555_v62 = vmin.f32 %v550_v59, 0.0  ;;  %v552_v0 = vmax.f32 %v550_v59, 0.0 }
 0x111   : > { %v564_v63 = vadd.f32 %v562_v61, %v551_v60  ;;  %v563_v1 = vmul.f32 %v1019_v57, %v555_v62 }
 0x113   : > { %566 = vst [vmem:[#allocation3 + $0x1] sm:$0xff] %v564_v63  ;;  %v565_v3 = vadd.f32 %v563_v1, %v552_v0 }
 0x115   : > { %567 = vst [vmem:[#allocation3 + $0x9] sm:$0xff] %v565_v3  ;;  %v568_v5 = vpack.c.bf16 %v565_v3, %v564_v63 }
 0x117   : > { %1175 = vmatmul.mubr.bf16.vlgmr.msra.gmra.mrb[4].mxu1 %v568_v5 }
 0x118   : > { %1199 = vmatpush3.bf16.msra.mxu1 %v1255_v4  ;;  %1214 = vmatprep.mubr.msk.bf16.mxu1 %vm1276_vm1, %v1275_v2 }
 0x119   : > { %1200 = vmatprep.subr.bf16.mxu1 %v1275_v2 }
 0x11a   : > { %v569_v7 = vld [vmem:[#allocation3] sm:$0xff] }
 0x11c   : > { %1201 = vmatpush3.bf16.msra.mxu1 %v1257_v6  ;;  %v570_v8 = vld [vmem:[#allocation3 + $0x8] sm:$0xff] }
 0x11d   : > { %1202 = vmatprep.subr.bf16.mxu1 %v1275_v2  ;;  %v573_v10 = vpack.c.bf16 %v570_v8, %v569_v7  ;;  %v571_v16 = vld [vmem:[#allocation3 + $0x2] sm:$0xff]  ;;  %v572_v17 = vld [vmem:[#allocation3 + $0xa] sm:$0xff] }
 0x11e   : > { %v785_v18 = vpack.c.bf16 %v572_v17, %v571_v16 }
 0x11f   : > { %1195 = vmatmul.mubr.bf16.vlgmr.msra.gmra.mrb[8].mxu0 %v573_v10 }
 0x120   : > { %1203 = vmatpush3.bf16.msra.mxu1 %v1259_v9 }
 0x121   : > { %1204 = vmatprep.subr.bf16.mxu1 %v1275_v2 }
 0x124   : > { %1205 = vmatpush3.bf16.msra.mxu1 %v1260_v11 }
 0x125   : > { %1206 = vmatprep.subr.bf16.mxu1 %v1275_v2 }
 0x128   : > { %1207 = vmatpush3.bf16.msra.mxu1 %v1261_v12 }
 0x129   : > { %1208 = vmatprep.subr.bf16.mxu1 %v1275_v2 }
 0x12c   : > { %1209 = vmatpush3.bf16.msra.mxu1 %v1262_v13 }
 0x12d   : > { %1210 = vmatprep.subr.bf16.mxu1 %v1275_v2 }
 0x130   : > { %1211 = vmatpush3.bf16.msra.mxu1 %v1263_v14 }
 0x131   : > { %1212 = vmatprep.subr.bf16.mxu1 %v1275_v2  ;;  %v1076_v2 = vld [vmem:[%s1519_s5] ss:$0 sm:$0xff] }
 0x134   : > { %1213 = vmatpush3.bf16.msra.mxu1 %v1264_v15 }
 0x137   : > { %1215 = vmatmul.mubr.bf16.vlgmr.msra.gmra.mrb[8].mxu1 %v785_v18 }
 0x1ea   : > { %v689_v19 = vpop.f32.mrb[4].mxu1 }
 0x1eb   : > { %v1176_v20 = vpop.f32.mrb[5].mxu1 }
 0x1ec   : > { %v692_v21 = vpop.f32.mrb[6].mxu1 }
 0x1ed   : > { %v1177_v22 = vpop.f32.mrb[7].mxu1 }
 0x1f2   : > { %v778_v23 = vpop.f32.mrb[8].mxu0 }
 0x1f3   : > { %v779_v24 = vadd.f32 %v778_v23, %v689_v19  ;;  %v1196_v25 = vpop.f32.mrb[9].mxu0 }
 0x1f4   : > { %v781_v26 = vpop.f32.mrb[10].mxu0 }
 0x1f5   : > { %v782_v27 = vadd.f32 %v781_v26, %v692_v21  ;;  %v1197_v28 = vpop.f32.mrb[11].mxu0 }
 0x20a   : > { %v885_v29 = vpop.f32.mrb[8].mxu1 }
 0x20b   : > { %v892_v30 = vadd.f32 %v885_v29, %v779_v24  ;;  %v1216_v31 = vpop.f32.mrb[9].mxu1 }
 0x20c   : > { %v888_v32 = vpop.f32.mrb[10].mxu1 }
 0x20d   : > { %v901_v33 = vadd.f32 %v1076_v2, %v892_v30  ;;  %v893_v34 = vadd.f32 %v888_v32, %v782_v27  ;;  %v1217_v35 = vpop.f32.mrb[11].mxu1 }
 0x20f   : > { %v906_v37 = vmin.f32 %v901_v33, 0.0  ;;  %v902_v38 = vadd.f32 %v1076_v2, %v893_v34  ;;  %v903_v39 = vmax.f32 %v901_v33, 0.0 }
 0x211   : > { %v914_v40 = vmul.f32 %v1077_v36, %v906_v37  ;;  %v907_v41 = vmin.f32 %v902_v38, 0.0  ;;  %v904_v43 = vmax.f32 %v902_v38, 0.0 }
 0x213   : > { %v916_v42 = vadd.f32 %v914_v40, %v903_v39  ;;  %v915_v44 = vmul.f32 %v1077_v36, %v907_v41 }
 0x215   : > { %918 = vst [vmem:[%s1333_s11] sm:$0xff] %v916_v42  ;;  %v917_v45 = vadd.f32 %v915_v44, %v904_v43 }
 0x217   : > { %919 = vst [vmem:[%s1333_s11 + $0x8] sm:$0xff] %v917_v45 }
 0x218 PF: > { %s17_s24 = sadd.s32 1, %s1272_s24  }
 0x219   : > { %p14_p5 = scmp.ge.s32.totalorder %s17_s24, 4  }
 0x21b   :  { %16 = sbr.rel (!%p14_p5) target bundleno = 1 (0x1), region = 86 }

</bundles_post_ra>
